<compile_context>
chip_gen: v7x
topology: tpu7x:2x2x1
jax: 0.10.0
libtpu: 0.0.40
codegen_flags: <defaults>
</compile_context>

<pallas_src>
import functools

import jax
import jax.numpy as jnp
from jax import lax
from jax.experimental import pallas as pl
from jax.experimental.pallas import tpu as pltpu

MARGIN = 0.7
EPS = 1e-8  # torch.nn.functional.cosine_similarity default eps


# ----------------------------------------------------------------------------
# Pallas kernel: one batch tile -> cosine sims -> hinge -> masked partial sum
# ----------------------------------------------------------------------------
def _triplet_loss_cosine_kernel(a_ref, p_ref, n_ref, o_ref, *,
                                margin, eps, batch, tb):
    i = pl.program_id(0)

    # DMA happened at native dtype; cast to f32 for the math.
    a = a_ref[...].astype(jnp.float32)
    p = p_ref[...].astype(jnp.float32)
    n = n_ref[...].astype(jnp.float32)

    # Row-wise reductions over the full (logical) feature axis.
    dot_ap = jnp.sum(a * p, axis=-1, keepdims=True)            # (tb, 1)
    dot_an = jnp.sum(a * n, axis=-1, keepdims=True)
    ssq_a = jnp.sum(a * a, axis=-1, keepdims=True)
    ssq_p = jnp.sum(p * p, axis=-1, keepdims=True)
    ssq_n = jnp.sum(n * n, axis=-1, keepdims=True)

    # 1 / max(||x||, eps) == rsqrt(max(||x||^2, eps^2))  (EUP, not VPU divide)
    eps2 = eps * eps
    inv_a = lax.rsqrt(jnp.maximum(ssq_a, eps2))
    cos_p = dot_ap * inv_a * lax.rsqrt(jnp.maximum(ssq_p, eps2))
    cos_n = dot_an * inv_a * lax.rsqrt(jnp.maximum(ssq_n, eps2))

    # relu((1 - cos_p) - (1 - cos_n) + margin) == relu(cos_n - cos_p + margin)
    loss = jnp.maximum(cos_n - cos_p + margin, 0.0)            # (tb, 1)

    # Mask batch-tail rows of a partial last tile (their VMEM contents are
    # undefined without wrapper-side padding).
    row = lax.broadcasted_iota(jnp.int32, (tb, 1), 0) + i * tb
    loss = jnp.where(row < batch, loss, 0.0)

    # Per-tile partial sum -> its own output block (keeps the grid "parallel").
    o_ref[...] = jnp.sum(loss, axis=0, keepdims=True).reshape(1, 1, 1)


# ----------------------------------------------------------------------------
# Wrapper
# ----------------------------------------------------------------------------
def triplet_loss_cosine(anchor, positive, negative, *, margin=MARGIN, eps=EPS,
                        max_batch_tile=1024):
    """loss = mean(relu((1 - cos(a,p)) - (1 - cos(a,n)) + margin))"""
    assert anchor.shape == positive.shape == negative.shape
    assert anchor.ndim == 2
    B, D = anchor.shape
    itemsize = jnp.dtype(anchor.dtype).itemsize

    # Derive the batch tile from this generation's VMEM (v7x has half of
    # v5e/v6e): 3 inputs x 2 pipeline buffers x tb x D bytes must fit the
    # scoped budget with headroom.
    try:
        vmem_phys = pltpu.get_tpu_info().vmem_capacity_bytes
    except Exception:  # conservative fallback (v7x-sized VMEM)
        vmem_phys = 64 << 20
    vmem_limit = (vmem_phys * 3) // 4
    budget = vmem_limit // 2

    sublane = 16 if itemsize <= 2 else 8     # sub-32-bit dtypes pack sublanes
    tb_target = budget // (3 * 2 * max(D, 1) * itemsize)
    tb_target = max(sublane, min(max_batch_tile,
                                 (tb_target // sublane) * sublane))
    # TODO(synk): for very large D (>= ~8192) add a feature-axis grid dim with
    # (tb,1) partial-sum scratch so tb can stay large within the VMEM budget.

    tb = B if B <= tb_target else tb_target  # full-B block or 8/16-aligned tile
    grid = pl.cdiv(B, tb)

    partials = pl.pallas_call(
        functools.partial(_triplet_loss_cosine_kernel,
                          margin=float(margin), eps=float(eps),
                          batch=int(B), tb=int(tb)),
        out_shape=jax.ShapeDtypeStruct((grid, 1, 1), jnp.float32),
        grid_spec=pltpu.PrefetchScalarGridSpec(
            num_scalar_prefetch=0,
            grid=(grid,),
            in_specs=[
                pl.BlockSpec((tb, D), lambda i: (i, 0)),
                pl.BlockSpec((tb, D), lambda i: (i, 0)),
                pl.BlockSpec((tb, D), lambda i: (i, 0)),
            ],
            out_specs=pl.BlockSpec((1, 1, 1), lambda i: (i, 0, 0)),
        ),
        compiler_params=pltpu.CompilerParams(
            dimension_semantics=("parallel",),   # independent tiles -> megacore
            vmem_limit_bytes=int(vmem_limit),
        ),
    )(anchor, positive, negative)

    # Tiny final reduction over per-tile partials + the 1/B mean.
    return jnp.sum(partials) * (1.0 / B)


# ----------------------------------------------------------------------------
# Pure-JAX reference (mirrors the PyTorch forward) for correctness checking
# ----------------------------------------------------------------------------
def triplet_loss_cosine_ref(a, p, n, margin=MARGIN, eps=EPS):
    a = a.astype(jnp.float32)
    p = p.astype(jnp.float32)
    n = n.astype(jnp.float32)

    def cos(x, y):
        dot = jnp.sum(x * y, axis=-1)
        nx = jnp.maximum(jnp.sqrt(jnp.sum(x * x, axis=-1)), eps)
        ny = jnp.maximum(jnp.sqrt(jnp.sum(y * y, axis=-1)), eps)
        return dot / (nx * ny)

    dist_p = 1.0 - cos(a, p)
    dist_n = 1.0 - cos(a, n)
    return jnp.mean(jnp.maximum(dist_p - dist_n + margin, 0.0))


if __name__ == "__main__":
    key = jax.random.PRNGKey(0)
    ka, kp, kn = jax.random.split(key, 3)

    # --- test 1: small, non-aligned shapes, single tile ---------------------
    B, D = 6, 200
    anchor = jax.random.normal(ka, (B, D), jnp.float32)
    positive = anchor + 0.1 * jax.random.normal(kp, (B, D), jnp.float32)
    negative = jax.random.normal(kn, (B, D), jnp.float32)

    loss = jax.block_until_ready(
        jax.jit(triplet_loss_cosine)(anchor, positive, negative))
    ref = jax.block_until_ready(
        jax.jit(triplet_loss_cosine_ref)(anchor, positive, negative))
    assert loss.shape == ()
    assert bool(jnp.isfinite(loss))
    assert abs(float(loss) - float(ref)) < 1e-5, (float(loss), float(ref))

    # --- test 2: multi-tile grid with a partial (masked) last tile ----------
    B2, D2 = 20, 200
    a2 = jax.random.normal(ka, (B2, D2), jnp.float32)
    p2 = a2 + 0.1 * jax.random.normal(kp, (B2, D2), jnp.float32)
    n2 = jax.random.normal(kn, (B2, D2), jnp.float32)

    small_tile = jax.jit(
        functools.partial(triplet_loss_cosine, max_batch_tile=8))
    loss2 = jax.block_until_ready(small_tile(a2, p2, n2))
    ref2 = jax.block_until_ready(jax.jit(triplet_loss_cosine_ref)(a2, p2, n2))
    assert abs(float(loss2) - float(ref2)) < 1e-5, (float(loss2), float(ref2))

    # --- test 3: native bf16 inputs (DMA at bf16, cast in-kernel) -----------
    a3 = anchor.astype(jnp.bfloat16)
    p3 = positive.astype(jnp.bfloat16)
    n3 = negative.astype(jnp.bfloat16)
    loss3 = jax.block_until_ready(jax.jit(triplet_loss_cosine)(a3, p3, n3))
    ref3 = jax.block_until_ready(jax.jit(triplet_loss_cosine_ref)(a3, p3, n3))
    assert abs(float(loss3) - float(ref3)) < 1e-4, (float(loss3), float(ref3))

    print("KERNEL_OK")
</pallas_src>

<mosaic_0001>
module attributes {stable_mosaic.version = 11 : i64} {
  func.func @_triplet_loss_cosine_kernel(%arg0: i32, %arg1: memref<6x200xf32, #tpu.memory_space<vmem>>, %arg2: memref<6x200xf32, #tpu.memory_space<vmem>>, %arg3: memref<6x200xf32, #tpu.memory_space<vmem>>, %arg4: memref<1x1x1xf32, #tpu.memory_space<vmem>>) attributes {dimension_semantics = [#tpu.dimension_semantics<parallel>], iteration_bounds = array<i64: 1>, scalar_prefetch = 0 : i64, scratch_operands = 0 : i64, tpu.core_type = #tpu.core_type<tc>, window_params = [{transform_indices = @transform_0, window_bounds = array<i64: 6, 200>}, {transform_indices = @transform_1, window_bounds = array<i64: 6, 200>}, {transform_indices = @transform_2, window_bounds = array<i64: 6, 200>}, {transform_indices = @transform_3, window_bounds = array<i64: 1, 1, 1>}]} {
    %c0 = arith.constant 0 : index
    %c0_0 = arith.constant 0 : index
    %0 = vector.load %arg1[%c0, %c0_0] : memref<6x200xf32, #tpu.memory_space<vmem>>, vector<6x200xf32>
    %c0_1 = arith.constant 0 : index
    %c0_2 = arith.constant 0 : index
    %1 = vector.load %arg2[%c0_1, %c0_2] : memref<6x200xf32, #tpu.memory_space<vmem>>, vector<6x200xf32>
    %c0_3 = arith.constant 0 : index
    %c0_4 = arith.constant 0 : index
    %2 = vector.load %arg3[%c0_3, %c0_4] : memref<6x200xf32, #tpu.memory_space<vmem>>, vector<6x200xf32>
    %3 = arith.mulf %0, %1 : vector<6x200xf32>
    %cst = arith.constant dense<0.000000e+00> : vector<6xf32>
    %4 = vector.multi_reduction <add>, %3, %cst [1] : vector<6x200xf32> to vector<6xf32>
    %5 = vector.shape_cast %4 : vector<6xf32> to vector<6x1xf32>
    %6 = arith.mulf %0, %2 : vector<6x200xf32>
    %cst_5 = arith.constant dense<0.000000e+00> : vector<6xf32>
    %7 = vector.multi_reduction <add>, %6, %cst_5 [1] : vector<6x200xf32> to vector<6xf32>
    %8 = vector.shape_cast %7 : vector<6xf32> to vector<6x1xf32>
    %9 = arith.mulf %0, %0 : vector<6x200xf32>
    %cst_6 = arith.constant dense<0.000000e+00> : vector<6xf32>
    %10 = vector.multi_reduction <add>, %9, %cst_6 [1] : vector<6x200xf32> to vector<6xf32>
    %11 = vector.shape_cast %10 : vector<6xf32> to vector<6x1xf32>
    %12 = arith.mulf %1, %1 : vector<6x200xf32>
    %cst_7 = arith.constant dense<0.000000e+00> : vector<6xf32>
    %13 = vector.multi_reduction <add>, %12, %cst_7 [1] : vector<6x200xf32> to vector<6xf32>
    %14 = vector.shape_cast %13 : vector<6xf32> to vector<6x1xf32>
    %15 = arith.mulf %2, %2 : vector<6x200xf32>
    %cst_8 = arith.constant dense<0.000000e+00> : vector<6xf32>
    %16 = vector.multi_reduction <add>, %15, %cst_8 [1] : vector<6x200xf32> to vector<6xf32>
    %17 = vector.shape_cast %16 : vector<6xf32> to vector<6x1xf32>
    %cst_9 = arith.constant 1.000000e-16 : f32
    %18 = vector.broadcast %cst_9 : f32 to vector<6x1xf32>
    %19 = arith.maximumf %11, %18 : vector<6x1xf32>
    %20 = math.rsqrt %19 : vector<6x1xf32>
    %21 = arith.mulf %5, %20 : vector<6x1xf32>
    %cst_10 = arith.constant 1.000000e-16 : f32
    %22 = vector.broadcast %cst_10 : f32 to vector<6x1xf32>
    %23 = arith.maximumf %14, %22 : vector<6x1xf32>
    %24 = math.rsqrt %23 : vector<6x1xf32>
    %25 = arith.mulf %21, %24 : vector<6x1xf32>
    %26 = arith.mulf %8, %20 : vector<6x1xf32>
    %cst_11 = arith.constant 1.000000e-16 : f32
    %27 = vector.broadcast %cst_11 : f32 to vector<6x1xf32>
    %28 = arith.maximumf %17, %27 : vector<6x1xf32>
    %29 = math.rsqrt %28 : vector<6x1xf32>
    %30 = arith.mulf %26, %29 : vector<6x1xf32>
    %31 = arith.subf %30, %25 : vector<6x1xf32>
    %cst_12 = arith.constant 0.699999988 : f32
    %32 = vector.broadcast %cst_12 : f32 to vector<6x1xf32>
    %33 = arith.addf %31, %32 : vector<6x1xf32>
    %cst_13 = arith.constant 0.000000e+00 : f32
    %34 = vector.broadcast %cst_13 : f32 to vector<6x1xf32>
    %35 = arith.maximumf %33, %34 : vector<6x1xf32>
    %36 = tpu.iota {dimensions = array<i32: 0>} : vector<6x1xi32>
    %c6_i32 = arith.constant 6 : i32
    %37 = arith.muli %arg0, %c6_i32 : i32
    %38 = vector.broadcast %37 : i32 to vector<6x1xi32>
    %39 = arith.addi %36, %38 : vector<6x1xi32>
    %c6_i32_14 = arith.constant 6 : i32
    %40 = vector.broadcast %c6_i32_14 : i32 to vector<6x1xi32>
    %41 = arith.cmpi slt, %39, %40 : vector<6x1xi32>
    %cst_15 = arith.constant 0.000000e+00 : f32
    %42 = vector.broadcast %cst_15 : f32 to vector<6x1xf32>
    %43 = arith.select %41, %35, %42 : vector<6x1xi1>, vector<6x1xf32>
    %cst_16 = arith.constant dense<0.000000e+00> : vector<1xf32>
    %44 = vector.multi_reduction <add>, %43, %cst_16 [0] : vector<6x1xf32> to vector<1xf32>
    %45 = vector.shape_cast %44 : vector<1xf32> to vector<1x1xf32>
    %46 = vector.shape_cast %45 : vector<1x1xf32> to vector<1x1x1xf32>
    %c0_17 = arith.constant 0 : index
    %c0_18 = arith.constant 0 : index
    %c0_19 = arith.constant 0 : index
    %47 = vector.load %arg4[%c0_17, %c0_18, %c0_19] : memref<1x1x1xf32, #tpu.memory_space<vmem>>, vector<1x1x1xf32>
    tpu.vector_store %arg4[%c0_17, %c0_18, %c0_19], %46 {strides = array<i32>} : memref<1x1x1xf32, #tpu.memory_space<vmem>>, vector<1x1x1xf32>,
    return
  }
  func.func @transform_0(%arg0: i32) -> (i32, i32) {
    %c0_i32 = arith.constant 0 : i32
    %c0_i32_0 = arith.constant 0 : i32
    return %arg0, %c0_i32 : i32, i32
  }
  func.func @transform_1(%arg0: i32) -> (i32, i32) {
    %c0_i32 = arith.constant 0 : i32
    %c0_i32_0 = arith.constant 0 : i32
    return %arg0, %c0_i32 : i32, i32
  }
  func.func @transform_2(%arg0: i32) -> (i32, i32) {
    %c0_i32 = arith.constant 0 : i32
    %c0_i32_0 = arith.constant 0 : i32
    return %arg0, %c0_i32 : i32, i32
  }
  func.func @transform_3(%arg0: i32) -> (i32, i32, i32) {
    %c0_i32 = arith.constant 0 : i32
    %c0_i32_0 = arith.constant 0 : i32
    %c0_i32_1 = arith.constant 0 : i32
    return %arg0, %c0_i32, %c0_i32_0 : i32, i32, i32
  }
}

</mosaic_0001>

<bundles_post_ra>
// kernel: triplet_loss_cosine.1
= control target key start
LH: loop header
LB: loop body
LE: loop exit
PB: predicated region body
PF: predicated region fallthrough
CT: control target
= control target key end

     0   :  { %8 = vsyncpa [#allocation3], 0  ;;  %s325_s0 = inlined_call_operand.hbm [shape: f32[6,200], index: 0, kind: input, shape index: {}]   ;;  %s326_s1 = inlined_call_operand.hbm [shape: f32[6,200], index: 1, kind: input, shape index: {}]   ;;  %s327_s2 = inlined_call_operand.hbm [shape: f32[6,200], index: 2, kind: input, shape index: {}]   ;;  %s328_s3 = inlined_call_operand.hbm [shape: f32[1,1,1], index: 3, kind: output, shape index: {}]  }
   0x1   :  { %9 = vsyncpa [#allocation6], 0 }
   0x2   :  { %10 = vsyncpa [#allocation4], 0  ;;  %s242_s12 = smov [#allocation5]   ;;  %s243_s14 = smov [#allocation2]  }
   0x3   :  { %s27_s13 = sshll.u32 %s242_s12, 4  ;;  %s17_s15 = sshll.u32 %s243_s14, 4  ;;  %s28_s13 = int_to_ptr.vmem [resolvable:$true] %s27_s13  ;;  %s18_s15 = int_to_ptr.vmem [resolvable:$true] %s17_s15 }
   0x4   :  { %s148_s18 = scalar_lea.hbm %s326_s1, 256 }
   0x5   :  { %p149_p0 = scmp.ne.s32.totalorder %s326_s1, %s148_s18  ;;  %p152_p1 = scmp.lt.u32.totalorder %s148_s18, %s326_s1 }
   0x7   :  { %p154_p2 = pnand %p152_p1, %p149_p0 }
   0x9   :  { %157 = shalt.err (!%p154_p2)
}
   0xa   :  { %s158_s23 = scalar_lea.vmem %s28_s13, 256  ;;  %p163_p4 = scmp.lt.s32.totalorder %s28_s13, %s28_s13 }
   0xb   :  { %p159_p3 = scmp.ne.s32.totalorder %s28_s13, %s158_s23  ;;  %p164_p5 = scmp.lt.s32.totalorder %s158_s23, %s158_s23 }
   0xd   :  { %p165_p6 = por %p164_p5, %p163_p4 }
   0xf   :  { %p166_p7 = pnand %p165_p6, %p159_p3 }
  0x11   :  { %169 = shalt.err (!%p166_p7)
}
  0x12   :  { %30 = dma.hbm_to_vmem [thread:$0]  %s326_s1, 256, %s28_s13, [#allocation6]  }
  0x13   :  { %s170_s28 = scalar_lea.hbm %s325_s0, 256 }
  0x14   :  { %p171_p8 = scmp.ne.s32.totalorder %s325_s0, %s170_s28  ;;  %p174_p9 = scmp.lt.u32.totalorder %s170_s28, %s325_s0 }
  0x16   :  { %p176_p10 = pnand %p174_p9, %p171_p8 }
  0x18   :  { %179 = shalt.err (!%p176_p10)
}
  0x19   :  { %s180_s6 = scalar_lea.vmem %s18_s15, 256  ;;  %p185_p12 = scmp.lt.s32.totalorder %s18_s15, %s18_s15 }
  0x1a   :  { %p181_p11 = scmp.ne.s32.totalorder %s18_s15, %s180_s6  ;;  %p186_p13 = scmp.lt.s32.totalorder %s180_s6, %s180_s6 }
  0x1c   :  { %p187_p0 = por %p186_p13, %p185_p12 }
  0x1e   :  { %p188_p1 = pnand %p187_p0, %p181_p11 }
  0x20   :  { %191 = shalt.err (!%p188_p1)
}
  0x21   :  { %20 = dma.hbm_to_vmem [thread:$0]  %s325_s0, 256, %s18_s15, [#allocation3]  }
  0x22   :  { %s244_s8 = smov [#allocation7]   ;;  %s192_s12 = scalar_lea.hbm %s327_s2, 256 }
  0x23   :  { %s37_s9 = sshll.u32 %s244_s8, 4  ;;  %p193_p2 = scmp.ne.s32.totalorder %s327_s2, %s192_s12  ;;  %s38_s9 = int_to_ptr.vmem [resolvable:$true] %s37_s9 }
  0x24   :  { %p196_p3 = scmp.lt.u32.totalorder %s192_s12, %s327_s2 }
  0x26   :  { %p198_p4 = pnand %p196_p3, %p193_p2 }
  0x28   :  { %201 = shalt.err (!%p198_p4)
}
  0x29   :  { %s202_s18 = scalar_lea.vmem %s38_s9, 256  ;;  %p207_p6 = scmp.lt.s32.totalorder %s38_s9, %s38_s9 }
  0x2a   :  { %p203_p5 = scmp.ne.s32.totalorder %s38_s9, %s202_s18  ;;  %p208_p7 = scmp.lt.s32.totalorder %s202_s18, %s202_s18 }
  0x2c   :  { %p209_p8 = por %p208_p7, %p207_p6 }
  0x2e   :  { %p210_p9 = pnand %p209_p8, %p203_p5 }
  0x30   :  { %213 = shalt.err (!%p210_p9)
}
  0x31   :  { %40 = dma.hbm_to_vmem [thread:$0]  %s327_s2, 256, %s38_s9, [#allocation6]  }
  0x32   :  { %236 = dma.done.wait [#allocation3], 256  }
  0x33   :  { %237 = vsyncadd [#allocation3], 4294967040 }
  0x34   :  { %238 = dma.done.wait [#allocation6], 512  }
  0x35   :  { %239 = vsyncadd [#allocation6], 4294966784  ;;  %vm58_vm0 = vcmask 1045504   ;;  %vm60_vm1 = vcmask 586752   ;;  %v50_v0 = vld [vmem:[#allocation2] sm:$0x3f]  ;;  %v106_v42 = vlaneseq }
  0x36   :  { %v51_v1 = vld [vmem:[#allocation2 + $0x8] sm:$0x3f]  ;;  %v54_v2 = vld [vmem:[#allocation7] sm:$0x3f]  ;;  %v72_v3 = vmul.f32 %v50_v0, %v50_v0  ;;  %v52_v7 = vld [vmem:[#allocation5] sm:$0x3f] }
  0x37   :  { %v73_v4 = vmul.f32 %v51_v1, %v51_v1  ;;  %v55_v5 = vld [vmem:[#allocation7 + $0x8] sm:$0x3f]  ;;  %v86_v6 = vmul.f32 %v54_v2, %v54_v2  ;;  %v53_v8 = vld [vmem:[#allocation5 + $0x8] sm:$0x3f]  ;;  %v79_v10 = vmul.f32 %v52_v7, %v52_v7  ;;  %v65_v12 = vmul.f32 %v54_v2, %v50_v0  ;;  %s245_s2 = smov [#allocation8]  }
  0x38   :  { %v87_v9 = vmul.f32 %v55_v5, %v55_v5  ;;  %v80_v11 = vmul.f32 %v53_v8, %v53_v8  ;;  %v74_v13 = vsel %vm58_vm0, %v72_v3, 0.0  ;;  %v66_v16 = vmul.f32 %v55_v5, %v51_v1  ;;  %s128_s19 = sshll.u32 %s245_s2, 4  ;;  %s129_s19 = int_to_ptr.vmem [resolvable:$true] %s128_s19 }
  0x39   :  { %v75_v14 = vsel %vm60_vm1, %v73_v4, 0.0  ;;  %v88_v15 = vsel %vm58_vm0, %v86_v6, 0.0  ;;  %v81_v19 = vsel %vm58_vm0, %v79_v10, 0.0  ;;  %v56_v22 = vmul.f32 %v52_v7, %v50_v0  ;;  %s214_s20 = scalar_lea.vmem %s129_s19, 16  ;;  %s218_s21 = scalar_lea.vmem %s129_s19, 32 }
  0x3a   :  { %v76_v17 = vadd.f32 %v75_v14, %v74_v13  ;;  %v89_v18 = vsel %vm60_vm1, %v87_v9, 0.0  ;;  %v82_v20 = vsel %vm60_vm1, %v80_v11, 0.0  ;;  %v57_v24 = vmul.f32 %v53_v8, %v51_v1  ;;  %p215_p10 = scmp.ne.s32.totalorder %s129_s19, %s214_s20  ;;  %p219_p11 = scmp.lt.s32.totalorder %s129_s19, %s129_s19 }
  0x3b   :  { %v90_v21 = vadd.f32 %v89_v18, %v88_v15  ;;  %v83_v23 = vadd.f32 %v82_v20, %v81_v19  ;;  %v67_v25 = vsel %vm58_vm0, %v65_v12, 0.0  ;;  %v68_v26 = vsel %vm60_vm1, %v66_v16, 0.0  ;;  %p220_p12 = scmp.lt.s32.totalorder %s218_s21, %s214_s20 }
  0x3c   :  { %77 = vadd.xlane.f32.xlu0 %v76_v17  ;;  %v59_v27 = vsel %vm58_vm0, %v56_v22, 0.0  ;;  %v61_v28 = vsel %vm60_vm1, %v57_v24, 0.0  ;;  %v69_v30 = vadd.f32 %v68_v26, %v67_v25  ;;  %v107_v47 = vshrl.u32 %v106_v42, 7 }
  0x3d   :  { %91 = vadd.xlane.f32.xlu1 %v90_v21  ;;  %v62_v29 = vadd.f32 %v61_v28, %v59_v27  ;;  %vm120_vm3 = vcmask 0   ;;  %p221_p13 = por %p220_p12, %p219_p11 }
  0x3e   :  { %vm111_vm2 = vcmp.lt.s32.totalorder %v107_v47, 6 }
  0x3f   :  { %p222_p0 = pnand %p221_p13, %p215_p10 }
  0x40   :  { %84 = vadd.xlane.f32.xlu0 %v83_v23 }
  0x41   :  { %63 = vadd.xlane.f32.xlu1 %v62_v29 }
  0x44   :  { %70 = vadd.xlane.f32.xlu0 %v69_v30 }
  0xc9   :  { %v78_v31 = vpop.xlane.xlu0 %77 }
  0xca   :  { %v93_v32 = vmax.f32 %v78_v31, 1e-16  ;;  %v92_v33 = vpop.xlane.xlu1 %91 }
  0xcb   :  { %v100_v34 = vmax.f32 %v92_v33, 1e-16 }
  0xcc   :  { %142 = vrsqrt.f32 %v93_v32 }
  0xcd   :  { %v85_v35 = vpop.xlane.xlu0 %84  ;;  %144 = vrsqrt.f32 %v100_v34 }
  0xce   :  { %v96_v36 = vmax.f32 %v85_v35, 1e-16  ;;  %v64_v39 = vpop.xlane.xlu1 %63 }
  0xd0   :  { %146 = vrsqrt.f32 %v96_v36 }
  0xd1   :  { %v71_v37 = vpop.xlane.xlu0 %70 }
  0xd6   :  { %v143_v38 = vpop.eup %142 }
  0xd7   :  { %v99_v40 = vmul.f32 %v143_v38, %v71_v37  ;;  %v145_v41 = vpop.eup %144  ;;  %v95_v43 = vmul.f32 %v143_v38, %v64_v39 }
  0xd9   :  { %v102_v45 = vmul.f32 %v145_v41, %v99_v40 }
  0xda   :  { %v147_v44 = vpop.eup %146 }
  0xdb   :  { %v98_v46 = vmul.f32 %v147_v44, %v95_v43 }
  0xdd   :  { %v103_v48 = vsub.f32 %v102_v45, %v98_v46 }
  0xdf   :  { %v104_v49 = vadd.f32 0.7, %v103_v48 }
  0xe1   :  { %v105_v50 = vmax.f32 %v104_v49, 0.0 }
  0xe3   :  { %v112_v51 = vsel %vm111_vm2, %v105_v50, 0.0 }
  0xe4   :  { %v113_v52 = vsel %vm58_vm0, %v112_v51, 0.0 }
  0xe5   :  { %v114_v53 = vrot.slane %v113_v52, 4 }
  0xe7   :  { %v115_v54 = vadd.f32 %v114_v53, %v113_v52 }
  0xe9   :  { %v116_v55 = vrot.slane %v115_v54, 2 }
  0xeb   :  { %v117_v56 = vadd.f32 %v116_v55, %v115_v54 }
  0xed   :  { %v118_v57 = vrot.slane %v117_v56, 1 }
  0xef   :  { %v119_v58 = vadd.f32 %v118_v57, %v117_v56 }
  0xf1   :  { %121 = vst.msk [vmem:[#allocation8] sm:$0x1] %vm120_vm3, %v119_v58 }
  0xf2   :  { %225 = shalt.err (!%p222_p0)
}
  0xf3   :  { %s226_s24 = scalar_lea.hbm %s328_s3, 16 }
  0xf4   :  { %p227_p1 = scmp.ne.s32.totalorder %s328_s3, %s226_s24  ;;  %p230_p2 = scmp.lt.u32.totalorder %s226_s24, %s328_s3 }
  0xf6   :  { %p232_p3 = pnand %p230_p2, %p227_p1 }
  0xf8   :  { %235 = shalt.err (!%p232_p3)
}
  0xf9   :  { %131 = dma.vmem_to_hbm [thread:$0]  %s129_s19, 16, %s328_s3, [#allocation4]  }
  0xfa   :  { %240 = dma.done.wait [#allocation4], 16  }
  0xfb   :  { %241 = vsyncadd [#allocation4], 4294967280 }
  0xfc   :  { %135 = vsyncpa [#allocation3], 1 }
  0xfd   :  { %136 = vsyncpa [#allocation6], 1 }
  0xfe   :  { %137 = vsyncpa [#allocation4], 1 }

</bundles_post_ra>
